<compile_context>
chip_gen: v5e
topology: v5e:2x2
jax: 0.10.0
libtpu: 0.0.40
codegen_flags: <defaults>
</compile_context>

<pallas_src>
import functools

import jax
import jax.numpy as jnp
from jax.experimental import pallas as pl
from jax.experimental.pallas import tpu as pltpu


_LANE = 128


def _round_up(v, m):
    return (v + m - 1) // m * m


def _pad2(a, rows, cols, dtype):
    a = a.astype(dtype)
    return jnp.pad(a, ((0, rows - a.shape[0]), (0, cols - a.shape[1])))


def _vmem_capacity_bytes():
    try:
        return int(pltpu.get_tpu_info().vmem_capacity_bytes)
    except Exception:
        return 64 * 1024 * 1024          # conservative per-core (v7x) fallback


def _choose_row_tile(n_pad, hp, use_dropout, budget):
    """Largest TM that divides n_pad and whose per-kernel VMEM footprint
    (double-buffered residents + double-buffered streamed tiles) fits budget."""
    def vmem_bytes(tm):
        # kernel 1: resident xw1(f32)+b1 ; streamed adj(bf16), [drop(bf16)], h1 out(f32)
        res1 = n_pad * hp * 4 + 8 * hp * 4
        st1 = tm * n_pad * 2 + tm * hp * 4 + (tm * hp * 2 if use_dropout else 0)
        # kernel 2: resident h1(f32)+W2(f32)+b2 ; streamed adj(bf16), mask(bf16), out(f32)
        res2 = 2 * n_pad * hp * 4 + 8 * n_pad * 4
        st2 = 2 * tm * n_pad * 2 + tm * n_pad * 4
        return max(2 * res1 + 2 * st1, 2 * res2 + 2 * st2)

    for tm in (1024, 512, 256, 128, 64, 32, 16):
        if tm <= n_pad and n_pad % tm == 0 and vmem_bytes(tm) <= budget:
            return tm
    # Residents alone blow the budget; smallest legal tile as last resort.
    # TODO(synk): for very large graphs add an 'arbitrary' column-tiling grid
    # axis over W2/b2/mask/out with a two-pass softmax so VMEM stays bounded
    # independently of N (needed to fit v7x's 64 MiB per TensorCore).
    return 16


# --------------------------- kernel 1: GCN layer 1 --------------------------
def _gcn1_kernel(xw1_ref, b1_ref, adj_ref, *refs, inv_keep):
    """h1 = [dropout](leaky_relu(adj @ (x @ W1) + b1)) for one row tile."""
    if inv_keep is None:
        (h1_ref,) = refs
    else:
        drop_ref, h1_ref = refs
    adj = adj_ref[...].astype(jnp.float32)              # bf16 0/1 -> f32 (exact)
    h = jnp.dot(adj, xw1_ref[...], preferred_element_type=jnp.float32) + b1_ref[...]
    h = jnp.maximum(h, 0.01 * h)                         # leaky_relu(0.01)
    if inv_keep is not None:
        h = h * (drop_ref[...].astype(jnp.float32) * inv_keep)
    h1_ref[...] = h


# ----------------------- kernel 2: GCN layer 2 + head -----------------------
def _gcn2_kernel(h1_ref, w2_ref, b2_ref, adj_ref, mask_ref, out_ref):
    """out = softmax((adj @ h1) @ W2 + b2, axis=1) * edge_mask for one row tile.
    Padded columns carry b2 == -1e30 (W2's pad columns are zero), so their
    exp() underflows to 0 and they never affect the softmax."""
    adj = adj_ref[...].astype(jnp.float32)
    t = jnp.dot(adj, h1_ref[...], preferred_element_type=jnp.float32)       # (TM, Hp)
    h2 = jnp.dot(t, w2_ref[...], preferred_element_type=jnp.float32) + b2_ref[...]
    m = jnp.max(h2, axis=1, keepdims=True)
    e = jnp.exp(h2 - m)
    probs = e / jnp.sum(e, axis=1, keepdims=True)        # exact: rows sum to 1
    out_ref[...] = probs * mask_ref[...].astype(jnp.float32)


def policy_network_forward(x, adj, edge_mask, params, dropout, dropout_key,
                           training=True, stream_dtype=jnp.bfloat16):
    """x: (N, E), adj / edge_mask: (N, N). Returns masked softmax probs (N, N) f32.

    adj / edge_mask / dropout keep-mask are streamed in `stream_dtype`
    (bfloat16 default — exact for 0/1 entries; pass jnp.float32 if adj holds
    fractional normalized weights)."""
    w1, b1, w2, b2 = params
    n, e = x.shape
    h = w1.shape[1]

    hp = _round_up(h, _LANE)
    np_ = _round_up(n, _LANE)
    use_dropout = bool(training) and float(dropout) > 0.0

    budget = min(int(0.85 * _vmem_capacity_bytes()), 112 * 1024 * 1024)
    tm = _choose_row_tile(np_, hp, use_dropout, budget)
    grid = (np_ // tm,)

    f32 = jnp.float32
    # xw1 = x @ W1 precomputed once (plain XLA matmul, f32): matches the
    # module's own association  gc1(x, adj) = adj @ (x @ W1) + b1.
    xw1_p = _pad2(jnp.dot(x.astype(f32), w1.astype(f32)), np_, hp, f32)
    b1_p = _pad2(b1.astype(f32).reshape(1, -1), 1, hp, f32)

    adj_p = _pad2(adj, np_, np_, stream_dtype)
    mask_p = _pad2(edge_mask, np_, np_, stream_dtype)

    w2_p = _pad2(w2.astype(f32), hp, np_, f32)
    # b2 tail padded with -1e30: since W2's padded columns are zero,
    # h2[:, pad] == b2[pad] == -1e30, which exactly excludes padded columns
    # from the softmax without any in-kernel masking work.
    b2_p = jnp.full((1, np_), -1e30, f32).at[:, :n].set(b2.astype(f32).reshape(1, -1))

    cparams = pltpu.CompilerParams(
        dimension_semantics=("parallel",), vmem_limit_bytes=budget)

    resident = lambda shape: pl.BlockSpec(shape, lambda i: (0, 0))
    row_tile = lambda cols: pl.BlockSpec((tm, cols), lambda i: (i, 0))

    # ---- layer 1: h1 = dropout(leaky_relu(adj @ xw1 + b1)) -----------------
    in_specs1 = [resident((np_, hp)), resident((1, hp)), row_tile(np_)]
    ops1 = [xw1_p, b1_p, adj_p]
    bytes1 = np_ * np_ * adj_p.dtype.itemsize + 2 * np_ * hp * 4
    if use_dropout:
        # TODO(synk): dropout pattern uses jax.random, not torch RNG (expected).
        keep = jax.random.bernoulli(dropout_key, 1.0 - float(dropout), (np_, hp))
        ops1.append(keep.astype(stream_dtype))           # 0/1, exact in bf16
        in_specs1.append(row_tile(hp))
        bytes1 += np_ * hp * ops1[-1].dtype.itemsize
        inv_keep = 1.0 / (1.0 - float(dropout))
    else:
        inv_keep = None

    h1 = pl.pallas_call(
        functools.partial(_gcn1_kernel, inv_keep=inv_keep),
        out_shape=jax.ShapeDtypeStruct((np_, hp), f32),
        grid=grid,
        in_specs=in_specs1,
        out_specs=row_tile(hp),
        compiler_params=cparams,
        cost_estimate=pl.CostEstimate(
            flops=2 * np_ * np_ * hp, transcendentals=0, bytes_accessed=bytes1),
    )(*ops1)

    # ---- layer 2 + softmax + edge mask: out = softmax((adj @ h1) @ W2 + b2) * mask
    out_p = pl.pallas_call(
        _gcn2_kernel,
        out_shape=jax.ShapeDtypeStruct((np_, np_), f32),
        grid=grid,
        in_specs=[resident((np_, hp)), resident((hp, np_)), resident((1, np_)),
                  row_tile(np_), row_tile(np_)],
        out_specs=row_tile(np_),
        compiler_params=cparams,
        cost_estimate=pl.CostEstimate(
            flops=4 * np_ * np_ * hp,
            transcendentals=np_ * np_,
            bytes_accessed=(np_ * np_ * (2 * adj_p.dtype.itemsize + 4)
                            + 2 * np_ * hp * 4)),
    )(h1, w2_p, b2_p, adj_p, mask_p)

    return out_p[:n, :n]


def init_params(key, num_nodes, embed_size, hidden_size):
    """Kipf-style GraphConvolution init: uniform(-1/sqrt(fan_out), 1/sqrt(fan_out))."""
    k1, k2, k3, k4 = jax.random.split(key, 4)
    s1 = 1.0 / jnp.sqrt(hidden_size)
    s2 = 1.0 / jnp.sqrt(num_nodes)
    w1 = jax.random.uniform(k1, (embed_size, hidden_size), jnp.float32, -s1, s1)
    b1 = jax.random.uniform(k2, (1, hidden_size), jnp.float32, -s1, s1)
    w2 = jax.random.uniform(k3, (hidden_size, num_nodes), jnp.float32, -s2, s2)
    b2 = jax.random.uniform(k4, (1, num_nodes), jnp.float32, -s2, s2)
    return w1, b1, w2, b2


if __name__ == "__main__":
    num_nodes, embed_size, hidden_size = 16, 8, 32
    dropout = 0.5

    key = jax.random.PRNGKey(0)
    k_emb, k_adj, k_mask, k_par, k_drop = jax.random.split(key, 5)

    # node embedding matrix (num_nodes, embed_size)
    x = jax.random.normal(k_emb, (num_nodes, embed_size), jnp.float32)

    # symmetric 0/1 adjacency with self loops (dense, as the torch.mm GCN expects)
    a = (jax.random.uniform(k_adj, (num_nodes, num_nodes)) > 0.7).astype(jnp.float32)
    adj = jnp.clip(a + a.T + jnp.eye(num_nodes, dtype=jnp.float32), 0.0, 1.0)

    edge_mask = (jax.random.uniform(k_mask, (num_nodes, num_nodes)) > 0.5).astype(
        jnp.float32)

    params = init_params(k_par, num_nodes, embed_size, hidden_size)

    out = policy_network_forward(x, adj, edge_mask, params, dropout, k_drop)
    out = jax.block_until_ready(out)

    assert out.shape == (num_nodes, num_nodes)
    assert out.dtype == jnp.float32
    assert bool(jnp.all(jnp.isfinite(out)))
    assert bool(jnp.all(out >= 0.0))

    # TODO(synk): get_action (top-k sampling over the upper-triangular masked
    # probs) is host-side post-processing, not part of forward; not kernelized.
    print("KERNEL_OK")
</pallas_src>

<mosaic_0001>
module attributes {stable_mosaic.version = 11 : i64} {
  func.func @_gcn1_kernel(%arg0: i32, %arg1: memref<128x128xf32, #tpu.memory_space<vmem>>, %arg2: memref<1x128xf32, #tpu.memory_space<vmem>>, %arg3: memref<128x128xbf16, #tpu.memory_space<vmem>>, %arg4: memref<128x128xbf16, #tpu.memory_space<vmem>>, %arg5: memref<128x128xf32, #tpu.memory_space<vmem>>) attributes {dimension_semantics = [#tpu.dimension_semantics<parallel>], iteration_bounds = array<i64: 1>, scalar_prefetch = 0 : i64, scratch_operands = 0 : i64, tpu.core_type = #tpu.core_type<tc>, window_params = [{pipeline_mode = #tpu.pipeline_mode<synchronous>, transform_indices = @transform_0, window_bounds = array<i64: 128, 128>}, {pipeline_mode = #tpu.pipeline_mode<synchronous>, transform_indices = @transform_1, window_bounds = array<i64: 1, 128>}, {transform_indices = @transform_2, window_bounds = array<i64: 128, 128>}, {transform_indices = @transform_3, window_bounds = array<i64: 128, 128>}, {transform_indices = @transform_4, window_bounds = array<i64: 128, 128>}]} {
    %c0 = arith.constant 0 : index
    %c0_0 = arith.constant 0 : index
    %0 = vector.load %arg3[%c0, %c0_0] : memref<128x128xbf16, #tpu.memory_space<vmem>>, vector<128x128xbf16>
    %1 = arith.extf %0 : vector<128x128xbf16> to vector<128x128xf32>
    %c0_1 = arith.constant 0 : index
    %c0_2 = arith.constant 0 : index
    %2 = vector.load %arg1[%c0_1, %c0_2] : memref<128x128xf32, #tpu.memory_space<vmem>>, vector<128x128xf32>
    %cst = arith.constant dense<0.000000e+00> : vector<128x128xf32>
    %3 = tpu.matmul %1, %2, %cst {dimension_numbers = #tpu.dot_dimension_numbers<[1], [0], [0], [1], [0, 0, 1, 1], [], []>} : vector<128x128xf32>, vector<128x128xf32>, vector<128x128xf32> -> vector<128x128xf32>
    %c0_3 = arith.constant 0 : index
    %c0_4 = arith.constant 0 : index
    %4 = vector.load %arg2[%c0_3, %c0_4] : memref<1x128xf32, #tpu.memory_space<vmem>>, vector<1x128xf32>
    %5 = vector.broadcast %4 : vector<1x128xf32> to vector<128x128xf32>
    %6 = arith.addf %3, %5 : vector<128x128xf32>
    %cst_5 = arith.constant 0.00999999977 : f32
    %7 = vector.broadcast %cst_5 : f32 to vector<128x128xf32>
    %8 = arith.mulf %7, %6 : vector<128x128xf32>
    %9 = arith.maximumf %6, %8 : vector<128x128xf32>
    %c0_6 = arith.constant 0 : index
    %c0_7 = arith.constant 0 : index
    %10 = vector.load %arg4[%c0_6, %c0_7] : memref<128x128xbf16, #tpu.memory_space<vmem>>, vector<128x128xbf16>
    %11 = arith.extf %10 : vector<128x128xbf16> to vector<128x128xf32>
    %cst_8 = arith.constant 2.000000e+00 : f32
    %12 = vector.broadcast %cst_8 : f32 to vector<128x128xf32>
    %13 = arith.mulf %11, %12 : vector<128x128xf32>
    %14 = arith.mulf %9, %13 : vector<128x128xf32>
    %c0_9 = arith.constant 0 : index
    %c0_10 = arith.constant 0 : index
    %15 = vector.load %arg5[%c0_9, %c0_10] : memref<128x128xf32, #tpu.memory_space<vmem>>, vector<128x128xf32>
    tpu.vector_store %arg5[%c0_9, %c0_10], %14 {strides = array<i32>} : memref<128x128xf32, #tpu.memory_space<vmem>>, vector<128x128xf32>,
    return
  }
  func.func @transform_0(%arg0: i32) -> (i32, i32) {
    %c0_i32 = arith.constant 0 : i32
    %c0_i32_0 = arith.constant 0 : i32
    %c0_i32_1 = arith.constant 0 : i32
    return %c0_i32, %c0_i32_0 : i32, i32
  }
  func.func @transform_1(%arg0: i32) -> (i32, i32) {
    %c0_i32 = arith.constant 0 : i32
    %c0_i32_0 = arith.constant 0 : i32
    %c0_i32_1 = arith.constant 0 : i32
    return %c0_i32, %c0_i32_0 : i32, i32
  }
  func.func @transform_2(%arg0: i32) -> (i32, i32) {
    %c0_i32 = arith.constant 0 : i32
    %c0_i32_0 = arith.constant 0 : i32
    return %arg0, %c0_i32 : i32, i32
  }
  func.func @transform_3(%arg0: i32) -> (i32, i32) {
    %c0_i32 = arith.constant 0 : i32
    %c0_i32_0 = arith.constant 0 : i32
    return %arg0, %c0_i32 : i32, i32
  }
  func.func @transform_4(%arg0: i32) -> (i32, i32) {
    %c0_i32 = arith.constant 0 : i32
    %c0_i32_0 = arith.constant 0 : i32
    return %arg0, %c0_i32 : i32, i32
  }
}

</mosaic_0001>

<bundles_post_ra>
// kernel: tpu_custom_call.1
= control target key start
LH: loop header
LB: loop body
LE: loop exit
PB: predicated region body
PF: predicated region fallthrough
CT: control target
= control target key end

     0   :  { %9 = vsyncpa [#allocation3], 0  ;;  %s666_s0 = inlined_call_operand.hbm [shape: f32[128,128], index: 0, kind: input, shape index: {}]   ;;  %s667_s1 = inlined_call_operand.hbm [shape: f32[1,128], index: 1, kind: input, shape index: {}]   ;;  %s668_s2 = inlined_call_operand.hbm [shape: bf16[128,128], index: 2, kind: input, shape index: {}]   ;;  %s669_s3 = inlined_call_operand.hbm [shape: bf16[128,128], index: 3, kind: input, shape index: {}]   ;;  %s670_s4 = inlined_call_operand.hbm [shape: f32[128,128], index: 4, kind: output, shape index: {}]  }
   0x1   :  { %10 = vsyncpa [#allocation6], 0 }
   0x2   :  { %11 = vsyncpa [#allocation9], 0  ;;  %s31_s17 = sshll.u32 %s667_s1, 4  ;;  %s32_s17 = int_to_ptr.hbm [resolvable:$true] %s31_s17 }
   0x3   :  { %12 = vsyncpa [#allocation4], 0  ;;  %s593_s18 = smov [#allocation5]   ;;  %s17_s22 = sshll.u32 %s666_s0, 4  ;;  %s18_s22 = int_to_ptr.hbm [resolvable:$true] %s17_s22 }
   0x4   :  { %s33_s19 = sshll.u32 %s593_s18, 4  ;;  %s594_s23 = smov [#allocation2]   ;;  %s34_s19 = int_to_ptr.vmem [resolvable:$true] %s33_s19 }
   0x5   :  { %36 = dma.hbm_to_vmem [thread:$0]  %s32_s17, 16, %s34_s19, [#allocation6]  }
   0x6   :  { %s19_s24 = sshll.u32 %s594_s23, 4  ;;  %s595_s25 = smov 128   ;;  %s20_s24 = int_to_ptr.vmem [resolvable:$true] %s19_s24 }
   0x7   :  { %s596_s26 = smov 8   ;;  %s41_s28 = sshll.u32 %s668_s2, 4  ;;  %s42_s28 = int_to_ptr.hbm [resolvable:$true] %s41_s28 }
   0x8   :  { %25 = dma.hbm_to_vmem [thread:$0]  %s18_s22, 2048, %s20_s24, [#allocation3], %s595_s25, %s595_s25, %s596_s26  }
   0x9   :  { %s597_s29 = smov [#allocation7]   ;;  %s54_s6 = sshll.u32 %s669_s3, 4  ;;  %s55_s6 = int_to_ptr.hbm [resolvable:$true] %s54_s6 }
   0xa   :  { %s43_s30 = sshll.u32 %s597_s29, 4  ;;  %s598_s7 = smov 64   ;;  %s44_s30 = int_to_ptr.vmem [resolvable:$true] %s43_s30 }
   0xb   :  { %s599_s8 = smov 4   ;;  %s600_s9 = smov [#allocation8]  }
   0xc   :  { %49 = dma.hbm_to_vmem [thread:$0]  %s42_s28, 1024, %s44_s30, [#allocation6], %s598_s7, %s598_s7, %s599_s8  }
   0xd   :  { %s56_s10 = sshll.u32 %s600_s9, 4  ;;  %s57_s10 = int_to_ptr.vmem [resolvable:$true] %s56_s10 }
   0xe   :  { %62 = dma.hbm_to_vmem [thread:$0]  %s55_s6, 1024, %s57_s10, [#allocation9], %s598_s7, %s598_s7, %s599_s8  }
   0xf   :  { %585 = dma.done.wait [#allocation3], 2048  }
  0x10   :  { %586 = vsyncadd [#allocation3], 4294965248 }
  0x11   :  { %587 = dma.done.wait [#allocation6], 1040  }
  0x12   :  { %588 = vsyncadd [#allocation6], 4294966256 }
  0x13   :  { %589 = dma.done.wait [#allocation9], 1024  }
  0x14   :  { %590 = vsyncadd [#allocation9], 4294966272  ;;  %v126_v0 = vld [vmem:[#allocation2 + $0x78] sm:$0xff]  ;;  %v125_v1 = vld [vmem:[#allocation2 + $0x70] sm:$0xff]  ;;  %s601_s2 = smov [#allocation10]   ;;  %s314_s13 = sshll.u32 %s670_s4, 4  ;;  %s315_s13 = int_to_ptr.hbm [resolvable:$true] %s314_s13 }
  0x15   :  { %408 = vmatpush.msra.mxu2 %v126_v0  ;;  %409 = vmatpush.msra.mxu3 %v126_v0  ;;  %v124_v2 = vld [vmem:[#allocation2 + $0x68] sm:$0xff]  ;;  %v123_v3 = vld [vmem:[#allocation2 + $0x60] sm:$0xff]  ;;  %v122_v4 = vld [vmem:[#allocation2 + $0x58] sm:$0xff]  ;;  %s312_s3 = sshll.u32 %s601_s2, 4  ;;  %s313_s3 = int_to_ptr.vmem [resolvable:$true] %s312_s3 }
  0x16   :  { %131 = vmatpush.msra.mxu0 %v126_v0  ;;  %407 = vmatpush.msra.mxu1 %v126_v0  ;;  %v121_v5 = vld [vmem:[#allocation2 + $0x50] sm:$0xff]  ;;  %v120_v6 = vld [vmem:[#allocation2 + $0x48] sm:$0xff]  ;;  %v119_v7 = vld [vmem:[#allocation2 + $0x40] sm:$0xff] }
  0x17   :  { %411 = vmatpush.msra.mxu2 %v125_v1  ;;  %412 = vmatpush.msra.mxu3 %v125_v1  ;;  %v118_v8 = vld [vmem:[#allocation2 + $0x38] sm:$0xff]  ;;  %v117_v9 = vld [vmem:[#allocation2 + $0x30] sm:$0xff]  ;;  %v116_v10 = vld [vmem:[#allocation2 + $0x28] sm:$0xff] }
  0x18   :  { %132 = vmatpush.msra.mxu0 %v125_v1  ;;  %410 = vmatpush.msra.mxu1 %v125_v1  ;;  %v115_v11 = vld [vmem:[#allocation2 + $0x20] sm:$0xff]  ;;  %v114_v12 = vld [vmem:[#allocation2 + $0x18] sm:$0xff]  ;;  %v113_v13 = vld [vmem:[#allocation2 + $0x10] sm:$0xff] }
  0x19   :  { %414 = vmatpush.msra.mxu2 %v124_v2  ;;  %415 = vmatpush.msra.mxu3 %v124_v2  ;;  %v396_v14 = vld [vmem:[#allocation7 + $0x20] sm:$0xff]   ;;  %v398_v15 = vld [vmem:[#allocation7 + $0x30] sm:$0xff]   ;;  %v397_v28 = vld [vmem:[#allocation7 + $0x28] sm:$0xff]  }
  0x1a   :  { %133 = vmatpush.msra.mxu0 %v124_v2  ;;  %413 = vmatpush.msra.mxu1 %v124_v2  ;;  %v112_v16 = vld [vmem:[#allocation2 + $0x8] sm:$0xff]  ;;  %v394_v18 = vld [vmem:[#allocation7 + $0x10] sm:$0xff]   ;;  %v111_v19 = vld [vmem:[#allocation2] sm:$0xff]  ;;  %v347_v20 = vunpack.c.l.bf16 %v396_v14  ;;  %v355_v21 = vunpack.c.l.bf16 %v398_v15  ;;  %v348_v24 = vunpack.c.h.bf16 %v396_v14  ;;  %v356_v25 = vunpack.c.h.bf16 %v398_v15 }
  0x1b   :  { %417 = vmatpush.msra.mxu2 %v123_v3  ;;  %418 = vmatpush.msra.mxu3 %v123_v3  ;;  %v330_v17 = vld [vmem:[#allocation7] sm:$0xff]   ;;  %v339_v23 = vunpack.c.l.bf16 %v394_v18  ;;  %v340_v27 = vunpack.c.h.bf16 %v394_v18  ;;  %v399_v29 = vld [vmem:[#allocation7 + $0x38] sm:$0xff]   ;;  %v393_v30 = vld [vmem:[#allocation7 + $0x8] sm:$0xff]   ;;  %v351_v32 = vunpack.c.l.bf16 %v397_v28  ;;  %v352_v36 = vunpack.c.h.bf16 %v397_v28 }
  0x1c   :  { %134 = vmatpush.msra.mxu0 %v123_v3  ;;  %416 = vmatpush.msra.mxu1 %v123_v3  ;;  %v331_v22 = vunpack.c.l.bf16 %v330_v17  ;;  %v332_v26 = vunpack.c.h.bf16 %v330_v17  ;;  %v395_v31 = vld [vmem:[#allocation7 + $0x18] sm:$0xff]   ;;  %v359_v33 = vunpack.c.l.bf16 %v399_v29  ;;  %v335_v34 = vunpack.c.l.bf16 %v393_v30  ;;  %v362_v40 = vld [vmem:[#allocation8] sm:$0xff]   ;;  %v401_v41 = vld [vmem:[#allocation8 + $0x10] sm:$0xff]  }
  0x1d   :  { %420 = vmatpush.msra.mxu2 %v122_v4  ;;  %421 = vmatpush.msra.mxu3 %v122_v4  ;;  %v343_v35 = vunpack.c.l.bf16 %v395_v31  ;;  %v360_v37 = vunpack.c.h.bf16 %v399_v29  ;;  %v336_v38 = vunpack.c.h.bf16 %v393_v30  ;;  %v344_v39 = vunpack.c.h.bf16 %v395_v31  ;;  %v642_v42 = vld [vmem:[#allocation5] ss:$0 sm:$0xff]  ;;  %v403_v45 = vld [vmem:[#allocation8 + $0x20] sm:$0xff]   ;;  %v405_v46 = vld [vmem:[#allocation8 + $0x30] sm:$0xff]  }
  0x1e   :  { %135 = vmatpush.msra.mxu0 %v122_v4  ;;  %419 = vmatpush.msra.mxu1 %v122_v4  ;;  %v363_v43 = vunpack.c.l.bf16 %v362_v40  ;;  %v371_v44 = vunpack.c.l.bf16 %v401_v41  ;;  %v379_v51 = vunpack.c.l.bf16 %v403_v45  ;;  %v387_v52 = vunpack.c.l.bf16 %v405_v46 }
  0x1f   :  { %423 = vmatpush.msra.mxu2 %v121_v5  ;;  %424 = vmatpush.msra.mxu3 %v121_v5  ;;  %v364_v1 = vunpack.c.h.bf16 %v362_v40  ;;  %v372_v2 = vunpack.c.h.bf16 %v401_v41  ;;  %v380_v15 = vunpack.c.h.bf16 %v403_v45 }
  0x20   :  { %136 = vmatpush.msra.mxu0 %v121_v5  ;;  %422 = vmatpush.msra.mxu1 %v121_v5  ;;  %v260_v54 = vmul.f32 2.0, %v363_v43  ;;  %v264_v56 = vmul.f32 2.0, %v371_v44  ;;  %v268_v63 = vmul.f32 2.0, %v379_v51  ;;  %v272_v0 = vmul.f32 2.0, %v387_v52 }
  0x21   :  { %426 = vmatpush.msra.mxu2 %v120_v6  ;;  %427 = vmatpush.msra.mxu3 %v120_v6  ;;  %v265_v14 = vmul.f32 2.0, %v372_v2  ;;  %v269_v29 = vmul.f32 2.0, %v380_v15 }
  0x22   :  { %137 = vmatpush.msra.mxu0 %v120_v6  ;;  %425 = vmatpush.msra.mxu1 %v120_v6 }
  0x23   :  { %429 = vmatpush.msra.mxu2 %v119_v7  ;;  %430 = vmatpush.msra.mxu3 %v119_v7 }
  0x24   :  { %138 = vmatpush.msra.mxu0 %v119_v7  ;;  %428 = vmatpush.msra.mxu1 %v119_v7 }
  0x25   :  { %432 = vmatpush.msra.mxu2 %v118_v8  ;;  %433 = vmatpush.msra.mxu3 %v118_v8 }
  0x26   :  { %139 = vmatpush.msra.mxu0 %v118_v8  ;;  %431 = vmatpush.msra.mxu1 %v118_v8 }
  0x27   :  { %435 = vmatpush.msra.mxu2 %v117_v9  ;;  %436 = vmatpush.msra.mxu3 %v117_v9 }
  0x28   :  { %140 = vmatpush.msra.mxu0 %v117_v9  ;;  %434 = vmatpush.msra.mxu1 %v117_v9 }
  0x29   :  { %438 = vmatpush.msra.mxu2 %v116_v10  ;;  %439 = vmatpush.msra.mxu3 %v116_v10 }
  0x2a   :  { %141 = vmatpush.msra.mxu0 %v116_v10  ;;  %437 = vmatpush.msra.mxu1 %v116_v10 }
  0x2b   :  { %441 = vmatpush.msra.mxu2 %v115_v11  ;;  %442 = vmatpush.msra.mxu3 %v115_v11 }
  0x2c   :  { %142 = vmatpush.msra.mxu0 %v115_v11  ;;  %440 = vmatpush.msra.mxu1 %v115_v11 }
  0x2d   :  { %444 = vmatpush.msra.mxu2 %v114_v12  ;;  %445 = vmatpush.msra.mxu3 %v114_v12 }
  0x2e   :  { %143 = vmatpush.msra.mxu0 %v114_v12  ;;  %443 = vmatpush.msra.mxu1 %v114_v12 }
  0x2f   :  { %447 = vmatpush.msra.mxu2 %v113_v13  ;;  %448 = vmatpush.msra.mxu3 %v113_v13 }
  0x30   :  { %144 = vmatpush.msra.mxu0 %v113_v13  ;;  %446 = vmatpush.msra.mxu1 %v113_v13  ;;  %v261_v13 = vmul.f32 2.0, %v364_v1 }
  0x31   :  { %450 = vmatpush.msra.mxu2 %v112_v16  ;;  %451 = vmatpush.msra.mxu3 %v112_v16 }
  0x32   :  { %145 = vmatpush.msra.mxu0 %v112_v16  ;;  %449 = vmatpush.msra.mxu1 %v112_v16  ;;  %v388_v16 = vunpack.c.h.bf16 %v405_v46 }
  0x33   :  { %453 = vmatpush.msra.mxu2 %v111_v19  ;;  %454 = vmatpush.msra.mxu3 %v111_v19 }
  0x34   :  { %171 = vmatmul.f32.vlgmr.msra.gmra.mxu2 %v347_v20  ;;  %183 = vmatmul.f32.vlgmr.msra.gmra.mxu3 %v355_v21  ;;  %v400_v21 = vld [vmem:[#allocation8 + $0x8] sm:$0xff]   ;;  %v273_v30 = vmul.f32 2.0, %v388_v16 }
  0x35   :  { %146 = vmatpush.msra.mxu0 %v111_v19  ;;  %452 = vmatpush.msra.mxu1 %v111_v19  ;;  %v367_v31 = vunpack.c.l.bf16 %v400_v21 }
  0x36   :  { %147 = vmatmul.f32.vlgmr.msra.gmra.mxu0 %v331_v22  ;;  %159 = vmatmul.f32.vlgmr.msra.gmra.mxu1 %v339_v23  ;;  %v402_v22 = vld [vmem:[#allocation8 + $0x18] sm:$0xff]  }
  0x37   :  { %v262_v46 = vmul.f32 2.0, %v367_v31 }
  0x3c   :  { %174 = vmatmul.f32.gmra.mxu2 %v348_v24  ;;  %186 = vmatmul.f32.gmra.mxu3 %v356_v25 }
  0x3e   :  { %150 = vmatmul.f32.gmra.mxu0 %v332_v26  ;;  %162 = vmatmul.f32.gmra.mxu1 %v340_v27 }
  0x44   :  { %177 = vmatmul.f32.gmra.mxu2 %v351_v32  ;;  %189 = vmatmul.f32.gmra.mxu3 %v359_v33  ;;  %v375_v32 = vunpack.c.l.bf16 %v402_v22 }
  0x46   :  { %153 = vmatmul.f32.gmra.mxu0 %v335_v34  ;;  %165 = vmatmul.f32.gmra.mxu1 %v343_v35 }
  0x4c   :  { %180 = vmatmul.f32.gmra.mxu2 %v352_v36  ;;  %192 = vmatmul.f32.gmra.mxu3 %v360_v37  ;;  %v404_v37 = vld [vmem:[#allocation8 + $0x28] sm:$0xff]  }
  0x4e   :  { %156 = vmatmul.f32.gmra.mxu0 %v336_v38  ;;  %168 = vmatmul.f32.gmra.mxu1 %v344_v39  ;;  %v406_v38 = vld [vmem:[#allocation8 + $0x38] sm:$0xff]  }
  0xb3   :  { %v148_v47 = vpop.f32.mrf.mxu0  ;;  %v160_v48 = vpop.f32.mrf.mxu1 }
  0xb4   :  { %v149_v49 = vadd.f32 %v642_v42, %v148_v47  ;;  %v161_v50 = vadd.f32 %v642_v42, %v160_v48  ;;  %v266_v47 = vmul.f32 2.0, %v375_v32  ;;  %v383_v48 = vunpack.c.l.bf16 %v404_v37 }
  0xb6   :  { %v196_v53 = vmul.f32 0.01, %v149_v49  ;;  %v200_v55 = vmul.f32 0.01, %v161_v50 }
  0xb7   :  { %v172_v57 = vpop.f32.mrf.mxu2  ;;  %v184_v58 = vpop.f32.mrf.mxu3 }
  0xb8   :  { %v212_v59 = vmax.f32 %v149_v49, %v196_v53  ;;  %v216_v60 = vmax.f32 %v161_v50, %v200_v55  ;;  %v173_v61 = vadd.f32 %v642_v42, %v172_v57  ;;  %v185_v62 = vadd.f32 %v642_v42, %v184_v58 }
  0xb9   :  { %v391_v49 = vunpack.c.l.bf16 %v406_v38 }
  0xba   :  { %v276_v3 = vmul.f32 %v260_v54, %v212_v59  ;;  %v280_v4 = vmul.f32 %v264_v56, %v216_v60  ;;  %v204_v5 = vmul.f32 0.01, %v173_v61  ;;  %v208_v6 = vmul.f32 0.01, %v185_v62 }
  0xbb   :  { %v151_v7 = vpop.f32.mrf.mxu0  ;;  %v163_v8 = vpop.f32.mrf.mxu1  ;;  %v270_v60 = vmul.f32 2.0, %v383_v48 }
  0xbc   :  { %292 = vst [vmem:[#allocation10] sm:$0xff] %v276_v3  ;;  %v220_v9 = vmax.f32 %v173_v61, %v204_v5  ;;  %v224_v10 = vmax.f32 %v185_v62, %v208_v6  ;;  %v152_v11 = vadd.f32 %v642_v42, %v151_v7  ;;  %v164_v12 = vadd.f32 %v642_v42, %v163_v8 }
  0xbd   :  { %296 = vst [vmem:[#allocation10 + $0x20] sm:$0xff] %v280_v4  ;;  %v274_v61 = vmul.f32 2.0, %v391_v49  ;;  %v368_v62 = vunpack.c.h.bf16 %v400_v21 }
  0xbe   :  { %v284_v17 = vmul.f32 %v268_v63, %v220_v9  ;;  %v288_v18 = vmul.f32 %v272_v0, %v224_v10  ;;  %v197_v19 = vmul.f32 0.01, %v152_v11  ;;  %v201_v20 = vmul.f32 0.01, %v164_v12 }
  0xbf   :  { %v175_v23 = vpop.f32.mrf.mxu2  ;;  %v187_v24 = vpop.f32.mrf.mxu3  ;;  %v376_v63 = vunpack.c.h.bf16 %v402_v22  ;;  %v263_v10 = vmul.f32 2.0, %v368_v62 }
  0xc0   :  { %300 = vst [vmem:[#allocation10 + $0x40] sm:$0xff] %v284_v17  ;;  %v213_v25 = vmax.f32 %v152_v11, %v197_v19  ;;  %v217_v26 = vmax.f32 %v164_v12, %v201_v20  ;;  %v176_v27 = vadd.f32 %v642_v42, %v175_v23  ;;  %v188_v28 = vadd.f32 %v642_v42, %v187_v24 }
  0xc1   :  { %304 = vst [vmem:[#allocation10 + $0x60] sm:$0xff] %v288_v18  ;;  %v267_v11 = vmul.f32 2.0, %v376_v63  ;;  %v384_v12 = vunpack.c.h.bf16 %v404_v37 }
  0xc2   :  { %v277_v33 = vmul.f32 %v261_v13, %v213_v25  ;;  %v281_v34 = vmul.f32 %v265_v14, %v217_v26  ;;  %v205_v35 = vmul.f32 0.01, %v176_v27  ;;  %v209_v36 = vmul.f32 0.01, %v188_v28 }
  0xc3   :  { %v154_v39 = vpop.f32.mrf.mxu0  ;;  %v166_v40 = vpop.f32.mrf.mxu1  ;;  %v392_v13 = vunpack.c.h.bf16 %v406_v38  ;;  %v271_v24 = vmul.f32 2.0, %v384_v12 }
  0xc4   :  { %293 = vst [vmem:[#allocation10 + $0x8] sm:$0xff] %v277_v33  ;;  %v221_v41 = vmax.f32 %v176_v27, %v205_v35  ;;  %v225_v43 = vmax.f32 %v188_v28, %v209_v36  ;;  %v155_v44 = vadd.f32 %v642_v42, %v154_v39  ;;  %v167_v45 = vadd.f32 %v642_v42, %v166_v40 }
  0xc5   :  { %297 = vst [vmem:[#allocation10 + $0x28] sm:$0xff] %v281_v34  ;;  %v275_v25 = vmul.f32 2.0, %v392_v13 }
  0xc6   :  { %v285_v50 = vmul.f32 %v269_v29, %v221_v41  ;;  %v289_v51 = vmul.f32 %v273_v30, %v225_v43  ;;  %v198_v52 = vmul.f32 0.01, %v155_v44  ;;  %v202_v53 = vmul.f32 0.01, %v167_v45 }
  0xc7   :  { %v178_v54 = vpop.f32.mrf.mxu2  ;;  %v190_v55 = vpop.f32.mrf.mxu3 }
  0xc8   :  { %301 = vst [vmem:[#allocation10 + $0x48] sm:$0xff] %v285_v50  ;;  %v214_v56 = vmax.f32 %v155_v44, %v198_v52  ;;  %v218_v57 = vmax.f32 %v167_v45, %v202_v53  ;;  %v179_v58 = vadd.f32 %v642_v42, %v178_v54  ;;  %v191_v59 = vadd.f32 %v642_v42, %v190_v55 }
  0xc9   :  { %305 = vst [vmem:[#allocation10 + $0x68] sm:$0xff] %v289_v51 }
  0xca   :  { %v278_v0 = vmul.f32 %v262_v46, %v214_v56  ;;  %v282_v1 = vmul.f32 %v266_v47, %v218_v57  ;;  %v206_v2 = vmul.f32 0.01, %v179_v58  ;;  %v210_v3 = vmul.f32 0.01, %v191_v59 }
  0xcb   :  { %v157_v4 = vpop.f32.mrf.mxu0  ;;  %v169_v5 = vpop.f32.mrf.mxu1 }
  0xcc   :  { %294 = vst [vmem:[#allocation10 + $0x10] sm:$0xff] %v278_v0  ;;  %v222_v6 = vmax.f32 %v179_v58, %v206_v2  ;;  %v226_v7 = vmax.f32 %v191_v59, %v210_v3  ;;  %v158_v8 = vadd.f32 %v642_v42, %v157_v4  ;;  %v170_v9 = vadd.f32 %v642_v42, %v169_v5 }
  0xcd   :  { %298 = vst [vmem:[#allocation10 + $0x30] sm:$0xff] %v282_v1 }
  0xce   :  { %v286_v14 = vmul.f32 %v270_v60, %v222_v6  ;;  %v290_v15 = vmul.f32 %v274_v61, %v226_v7  ;;  %v199_v16 = vmul.f32 0.01, %v158_v8  ;;  %v203_v17 = vmul.f32 0.01, %v170_v9 }
  0xcf   :  { %v181_v18 = vpop.f32.mrf.mxu2  ;;  %v193_v19 = vpop.f32.mrf.mxu3 }
  0xd0   :  { %302 = vst [vmem:[#allocation10 + $0x50] sm:$0xff] %v286_v14  ;;  %v215_v20 = vmax.f32 %v158_v8, %v199_v16  ;;  %v219_v21 = vmax.f32 %v170_v9, %v203_v17  ;;  %v182_v22 = vadd.f32 %v642_v42, %v181_v18  ;;  %v194_v23 = vadd.f32 %v642_v42, %v193_v19 }
  0xd1   :  { %306 = vst [vmem:[#allocation10 + $0x70] sm:$0xff] %v290_v15 }
  0xd2   :  { %v279_v26 = vmul.f32 %v263_v10, %v215_v20  ;;  %v283_v27 = vmul.f32 %v267_v11, %v219_v21  ;;  %v207_v28 = vmul.f32 0.01, %v182_v22  ;;  %v211_v29 = vmul.f32 0.01, %v194_v23 }
  0xd4   :  { %295 = vst [vmem:[#allocation10 + $0x18] sm:$0xff] %v279_v26  ;;  %v223_v30 = vmax.f32 %v182_v22, %v207_v28  ;;  %v227_v31 = vmax.f32 %v194_v23, %v211_v29 }
  0xd5   :  { %299 = vst [vmem:[#allocation10 + $0x38] sm:$0xff] %v283_v27 }
  0xd6   :  { %v287_v32 = vmul.f32 %v271_v24, %v223_v30  ;;  %v291_v33 = vmul.f32 %v275_v25, %v227_v31 }
  0xd8   :  { %303 = vst [vmem:[#allocation10 + $0x58] sm:$0xff] %v287_v32 }
  0xd9   :  { %307 = vst [vmem:[#allocation10 + $0x78] sm:$0xff] %v291_v33 }
  0xda   :  { %320 = dma.vmem_to_hbm [thread:$0]  %s313_s3, 2048, %s315_s13, [#allocation4], %s595_s25, %s595_s25, %s596_s26  }
  0xdb   :  { %591 = dma.done.wait [#allocation4], 2048  }
  0xdc   :  { %592 = vsyncadd [#allocation4], 4294965248 }
  0xdd   :  { %325 = vsyncpa [#allocation3], 1 }
  0xde   :  { %326 = vsyncpa [#allocation6], 1 }
  0xdf   :  { %327 = vsyncpa [#allocation9], 1 }
  0xe0   :  { %328 = vsyncpa [#allocation4], 1 }

</bundles_post_ra>
